<compile_context>
chip_gen: v5e
topology: v5e:2x2
jax: 0.10.0
libtpu: 0.0.40
codegen_flags: <defaults>
</compile_context>

<pallas_src>
import jax
import jax.numpy as jnp
from jax.experimental import pallas as pl
from jax.experimental.pallas import tpu as pltpu


def _round_up(x: int, m: int) -> int:
    return ((x + m - 1) // m) * m


def _linear_kernel(w_ref, b_ref, x_ref, o_ref):
    # w_ref: VMEM (128, 96)     block-diagonal replication of W^T (grid-invariant)
    # b_ref: VMEM (1, 96)       bias tiled 32x                     (grid-invariant)
    # x_ref: VMEM (TILE_M, 128) TILE_M rows of 32 samples x 4 features each
    # o_ref: VMEM (TILE_M, 96)  TILE_M rows of 32 samples x 3 outputs each
    o_ref[...] = (
        jnp.dot(
            x_ref[...],
            w_ref[...],
            preferred_element_type=jnp.float32,
            precision=jax.lax.Precision.HIGHEST,
        )
        + b_ref[...]
    )


def net_forward(x, weight, bias, *, tile_m=4096):
    """Forward of Net: y = x @ weight.T + bias.

    x: (N, 4) f32, weight: (3, 4) f32 (PyTorch convention), bias: (3,) f32.
    """
    x = x.astype(jnp.float32)
    weight = weight.astype(jnp.float32)
    bias = bias.astype(jnp.float32)

    n, in_f = x.shape
    out_f, in_f_w = weight.shape
    assert in_f == in_f_w

    LANE = 128
    assert LANE % in_f == 0
    r = LANE // in_f          # samples packed per 128-lane row (32)
    ow = r * out_f            # output row width (96)

    # Pad the batch only up to a multiple of r so (N, in_f) -> (M, 128) is a
    # free, layout-preserving reshape.  No transposes anywhere.
    n_pad = _round_up(n, r)
    if n_pad != n:
        x = jnp.pad(x, ((0, n_pad - n), (0, 0)))
    m = n_pad // r
    x2 = x.reshape(m, LANE)   # free reshape: rows of 32 interleaved samples

    # Block-diagonal replication of W^T so the interleaved rows go straight
    # through the MXU: (128, 96) with W^T on the 32 diagonal (4, 3) blocks.
    w_block = jnp.kron(jnp.eye(r, dtype=jnp.float32), weight.T)   # (128, 96)
    b_row = jnp.tile(bias, r)[None, :]                            # (1, 96)

    # Tile over rows of x2.  4096 rows -> ~7 MiB double-buffered VMEM (fits
    # v5e's 16 MiB default scoped VMEM); cap so the grid has >= 2 steps when
    # the problem is big enough to feed both v7x TensorCores.
    tile = min(tile_m, _round_up(pl.cdiv(m, 2), 8))
    if tile >= m:
        tile = m              # small input: single full block
    grid = (pl.cdiv(m, tile),)  # last block may be partial: OOB reads are
                                # garbage, OOB writes are clipped by Pallas.

    y2 = pl.pallas_call(
        _linear_kernel,
        out_shape=jax.ShapeDtypeStruct((m, ow), jnp.float32),
        grid=grid,
        in_specs=[
            pl.BlockSpec((LANE, ow), lambda i: (0, 0)),    # weight: grid-invariant
            pl.BlockSpec((1, ow), lambda i: (0, 0)),       # bias:   grid-invariant
            pl.BlockSpec((tile, LANE), lambda i: (i, 0)),  # streaming x rows
        ],
        out_specs=pl.BlockSpec((tile, ow), lambda i: (i, 0)),
        compiler_params=pltpu.CompilerParams(
            # Independent row tiles -> shard across TensorCores (v7x megacore).
            dimension_semantics=("parallel",),
        ),
        cost_estimate=pl.CostEstimate(
            flops=2 * m * LANE * ow,
            transcendentals=0,
            bytes_accessed=4 * (m * LANE + m * ow + LANE * ow + ow),
        ),
    )(w_block, b_row, x2)

    # Free reshape back to (n_pad, out_f); drop the batch padding, if any.
    y = y2.reshape(n_pad, out_f)
    return y[:n] if n_pad != n else y


if __name__ == "__main__":
    key = jax.random.PRNGKey(0)
    kx, kw, kb = jax.random.split(key, 3)

    # Iris-like input: 150 samples x 4 features (also exercises the
    # non-multiple-of-32 batch tail / partial-block path).
    N, IN_F, OUT_F = 150, 4, 3
    x = jax.random.normal(kx, (N, IN_F), dtype=jnp.float32)

    # Deterministic parameter init mimicking nn.Linear's uniform(-1/sqrt(in), 1/sqrt(in)).
    bound = 1.0 / (IN_F ** 0.5)
    weight = jax.random.uniform(kw, (OUT_F, IN_F), jnp.float32, -bound, bound)
    bias = jax.random.uniform(kb, (OUT_F,), jnp.float32, -bound, bound)

    y = net_forward(x, weight, bias)
    jax.block_until_ready(y)

    # Correctness check against a full-precision JAX reference.
    y_ref = jnp.dot(x, weight.T, precision=jax.lax.Precision.HIGHEST) + bias
    assert y.shape == (N, OUT_F)
    assert jnp.allclose(y, y_ref, atol=1e-5, rtol=1e-5)

    print("KERNEL_OK")
</pallas_src>

<mosaic_0001>
module attributes {stable_mosaic.version = 11 : i64} {
  func.func @_linear_kernel(%arg0: i32, %arg1: memref<128x96xf32, #tpu.memory_space<vmem>>, %arg2: memref<1x96xf32, #tpu.memory_space<vmem>>, %arg3: memref<5x128xf32, #tpu.memory_space<vmem>>, %arg4: memref<5x96xf32, #tpu.memory_space<vmem>>) attributes {dimension_semantics = [#tpu.dimension_semantics<parallel>], iteration_bounds = array<i64: 1>, scalar_prefetch = 0 : i64, scratch_operands = 0 : i64, tpu.core_type = #tpu.core_type<tc>, window_params = [{pipeline_mode = #tpu.pipeline_mode<synchronous>, transform_indices = @transform_0, window_bounds = array<i64: 128, 96>}, {pipeline_mode = #tpu.pipeline_mode<synchronous>, transform_indices = @transform_1, window_bounds = array<i64: 1, 96>}, {transform_indices = @transform_2, window_bounds = array<i64: 5, 128>}, {transform_indices = @transform_3, window_bounds = array<i64: 5, 96>}]} {
    %c0 = arith.constant 0 : index
    %c0_0 = arith.constant 0 : index
    %0 = vector.load %arg3[%c0, %c0_0] : memref<5x128xf32, #tpu.memory_space<vmem>>, vector<5x128xf32>
    %c0_1 = arith.constant 0 : index
    %c0_2 = arith.constant 0 : index
    %1 = vector.load %arg1[%c0_1, %c0_2] : memref<128x96xf32, #tpu.memory_space<vmem>>, vector<128x96xf32>
    %cst = arith.constant dense<0.000000e+00> : vector<5x96xf32>
    %2 = tpu.matmul %0, %1, %cst {dimension_numbers = #tpu.dot_dimension_numbers<[1], [0], [0], [1], [0, 0, 1, 1], [], []>, precision = #tpu.contract_precision<fp32>} : vector<5x128xf32>, vector<128x96xf32>, vector<5x96xf32> -> vector<5x96xf32>
    %c0_3 = arith.constant 0 : index
    %c0_4 = arith.constant 0 : index
    %3 = vector.load %arg2[%c0_3, %c0_4] : memref<1x96xf32, #tpu.memory_space<vmem>>, vector<1x96xf32>
    %4 = vector.broadcast %3 : vector<1x96xf32> to vector<5x96xf32>
    %5 = arith.addf %2, %4 : vector<5x96xf32>
    %c0_5 = arith.constant 0 : index
    %c0_6 = arith.constant 0 : index
    %6 = vector.load %arg4[%c0_5, %c0_6] : memref<5x96xf32, #tpu.memory_space<vmem>>, vector<5x96xf32>
    tpu.vector_store %arg4[%c0_5, %c0_6], %5 {strides = array<i32>} : memref<5x96xf32, #tpu.memory_space<vmem>>, vector<5x96xf32>,
    return
  }
  func.func @transform_0(%arg0: i32) -> (i32, i32) {
    %c0_i32 = arith.constant 0 : i32
    %c0_i32_0 = arith.constant 0 : i32
    %c0_i32_1 = arith.constant 0 : i32
    return %c0_i32, %c0_i32_0 : i32, i32
  }
  func.func @transform_1(%arg0: i32) -> (i32, i32) {
    %c0_i32 = arith.constant 0 : i32
    %c0_i32_0 = arith.constant 0 : i32
    %c0_i32_1 = arith.constant 0 : i32
    return %c0_i32, %c0_i32_0 : i32, i32
  }
  func.func @transform_2(%arg0: i32) -> (i32, i32) {
    %c0_i32 = arith.constant 0 : i32
    %c0_i32_0 = arith.constant 0 : i32
    return %arg0, %c0_i32 : i32, i32
  }
  func.func @transform_3(%arg0: i32) -> (i32, i32) {
    %c0_i32 = arith.constant 0 : i32
    %c0_i32_0 = arith.constant 0 : i32
    return %arg0, %c0_i32 : i32, i32
  }
}

</mosaic_0001>

<bundles_post_ra>
// kernel: tpu_custom_call.1
= control target key start
LH: loop header
LB: loop body
LE: loop exit
PB: predicated region body
PF: predicated region fallthrough
CT: control target
= control target key end

     0   :  { %s739_s0 = inlined_call_operand.vmem [shape: f32[128,96], index: 0, kind: input, shape index: {}]   ;;  %s740_s1 = inlined_call_operand.vmem [shape: f32[1,96], index: 1, kind: input, shape index: {}]   ;;  %s741_s2 = inlined_call_operand.vmem [shape: f32[5,128], index: 2, kind: input, shape index: {}]   ;;  %s742_s3 = inlined_call_operand.hbm [shape: f32[5,96], index: 3, kind: output, shape index: {}]  }
   0x1   :  { %v31_v0 = vld [vmem:[%s739_s0 + $0x78] sm:$0xff]  ;;  %v30_v1 = vld [vmem:[%s739_s0 + $0x70] sm:$0xff]  ;;  %v29_v2 = vld [vmem:[%s739_s0 + $0x68] sm:$0xff] }
   0x2   :  { %v453_v3 = vand.u32 4294901760, %v31_v0  ;;  %v455_v4 = vand.u32 4294901760, %v30_v1  ;;  %v457_v5 = vand.u32 4294901760, %v29_v2  ;;  %v28_v6 = vld [vmem:[%s739_s0 + $0x60] sm:$0xff]  ;;  %v27_v7 = vld [vmem:[%s739_s0 + $0x58] sm:$0xff]  ;;  %v26_v8 = vld [vmem:[%s739_s0 + $0x50] sm:$0xff] }
   0x3   :  { %v468_v9 = vand.u32 4294901760, %v28_v6  ;;  %v470_v10 = vand.u32 4294901760, %v27_v7  ;;  %v472_v11 = vand.u32 4294901760, %v26_v8  ;;  %v25_v12 = vld [vmem:[%s739_s0 + $0x48] sm:$0xff]  ;;  %v24_v13 = vld [vmem:[%s739_s0 + $0x40] sm:$0xff]  ;;  %v23_v21 = vld [vmem:[%s739_s0 + $0x38] sm:$0xff] }
   0x4   :  { %37 = vmatpush.msra.mxu0 %v453_v3  ;;  %v482_v14 = vsub.f32 %v31_v0, %v453_v3  ;;  %v485_v15 = vsub.f32 %v30_v1, %v455_v4  ;;  %v488_v16 = vsub.f32 %v29_v2, %v457_v5  ;;  %v490_v17 = vand.u32 4294901760, %v25_v12  ;;  %233 = vmatpush.msra.mxu3 %v453_v3 }
   0x5   :  { %v494_v18 = vsub.f32 %v28_v6, %v468_v9  ;;  %v497_v19 = vsub.f32 %v27_v7, %v470_v10  ;;  %v499_v20 = vand.u32 4294901760, %v24_v13  ;;  %v509_v25 = vsub.f32 %v26_v8, %v472_v11 }
   0x6   :  { %39 = vmatpush.msra.mxu0 %v455_v4  ;;  %v79_v22 = vand.u32 4294901760, %v482_v14  ;;  %v85_v23 = vand.u32 4294901760, %v485_v15  ;;  %v91_v24 = vand.u32 4294901760, %v488_v16  ;;  %180 = vmatpush.msra.mxu2 %v482_v14  ;;  %v515_v28 = vsub.f32 %v25_v12, %v490_v17 }
   0x7   :  { %v97_v26 = vand.u32 4294901760, %v494_v18  ;;  %v103_v27 = vand.u32 4294901760, %v497_v19  ;;  %235 = vmatpush.msra.mxu3 %v455_v4 }
   0x8   :  { %8 = vsyncpa [#allocation3], 0  ;;  %v80_v29 = vsub.f32 %v482_v14, %v79_v22  ;;  %41 = vmatpush.msra.mxu0 %v457_v5  ;;  %v86_v30 = vsub.f32 %v485_v15, %v85_v23  ;;  %v92_v31 = vsub.f32 %v488_v16, %v91_v24  ;;  %v528_v32 = vand.u32 4294901760, %v23_v21  ;;  %183 = vmatpush.msra.mxu2 %v485_v15  ;;  %v22_v34 = vld [vmem:[%s739_s0 + $0x30] sm:$0xff]  ;;  %v21_v35 = vld [vmem:[%s739_s0 + $0x28] sm:$0xff]  ;;  %s423_s19 = smov [#allocation2]  }
   0x9   :  { %v532_v33 = vsub.f32 %v24_v13, %v499_v20  ;;  %237 = vmatpush.msra.mxu3 %v457_v5  ;;  %v98_v38 = vsub.f32 %v494_v18, %v97_v26  ;;  %v109_v39 = vand.u32 4294901760, %v509_v25  ;;  %v104_v40 = vsub.f32 %v497_v19, %v103_v27  ;;  %v20_v42 = vld [vmem:[%s739_s0 + $0x20] sm:$0xff]  ;;  %v19_v47 = vld [vmem:[%s739_s0 + $0x18] sm:$0xff]  ;;  %v18_v53 = vld [vmem:[%s739_s0 + $0x10] sm:$0xff]  ;;  %s384_s20 = sshll.u32 %s423_s19, 4  ;;  %s386_s23 = sshll.u32 %s742_s3, 4  ;;  %s385_s20 = int_to_ptr.vmem [resolvable:$true] %s384_s20  ;;  %s387_s23 = int_to_ptr.hbm [resolvable:$true] %s386_s23 }
   0xa   :  { %v81_v36 = vand.u32 4294901760, %v80_v29  ;;  %v87_v37 = vand.u32 4294901760, %v86_v30  ;;  %43 = vmatpush.msra.mxu0 %v468_v9  ;;  %186 = vmatpush.msra.mxu2 %v488_v16  ;;  %v115_v41 = vand.u32 4294901760, %v515_v28  ;;  %v93_v43 = vand.u32 4294901760, %v92_v31  ;;  %v17_v61 = vld [vmem:[%s739_s0 + $0x8] sm:$0xff]  ;;  %v16_v2 = vld [vmem:[%s739_s0] sm:$0xff] }
   0xb   :  { %239 = vmatpush.msra.mxu3 %v468_v9  ;;  %v556_v44 = vand.u32 4294901760, %v22_v34  ;;  %v559_v45 = vsub.f32 %v23_v21, %v528_v32  ;;  %v561_v46 = vand.u32 4294901760, %v21_v35  ;;  %v121_v48 = vand.u32 4294901760, %v532_v33  ;;  %v15_v29 = vld [vmem:[%s741_s2] sm:$0x1f] }
   0xc   :  { %82 = vmatpush.msra.mxu1 %v81_v36  ;;  %45 = vmatpush.msra.mxu0 %v470_v10  ;;  %v99_v49 = vand.u32 4294901760, %v98_v38  ;;  %v110_v50 = vsub.f32 %v509_v25, %v109_v39  ;;  %v576_v52 = vand.u32 4294901760, %v20_v42  ;;  %v581_v54 = vand.u32 4294901760, %v19_v47 }
   0xd   :  { %189 = vmatpush.msra.mxu2 %v494_v18  ;;  %241 = vmatpush.msra.mxu3 %v470_v10  ;;  %v574_v51 = vsub.f32 %v22_v34, %v556_v44  ;;  %v105_v55 = vand.u32 4294901760, %v104_v40  ;;  %v116_v56 = vsub.f32 %v515_v28, %v115_v41  ;;  %v127_v57 = vand.u32 4294901760, %v559_v45 }
   0xe   :  { %88 = vmatpush.msra.mxu1 %v87_v37  ;;  %47 = vmatpush.msra.mxu0 %v472_v11  ;;  %v591_v58 = vsub.f32 %v21_v35, %v561_v46  ;;  %v122_v59 = vsub.f32 %v532_v33, %v121_v48  ;;  %v596_v60 = vand.u32 4294901760, %v18_v53  ;;  %v111_v62 = vand.u32 4294901760, %v110_v50 }
   0xf   :  { %192 = vmatpush.msra.mxu2 %v497_v19  ;;  %243 = vmatpush.msra.mxu3 %v472_v11  ;;  %v133_v63 = vand.u32 4294901760, %v574_v51  ;;  %v606_v0 = vsub.f32 %v20_v42, %v576_v52  ;;  %v609_v1 = vsub.f32 %v19_v47, %v581_v54  ;;  %v117_v6 = vand.u32 4294901760, %v116_v56 }
  0x10   :  { %94 = vmatpush.msra.mxu1 %v93_v43  ;;  %49 = vmatpush.msra.mxu0 %v490_v17  ;;  %v128_v7 = vsub.f32 %v559_v45, %v127_v57  ;;  %v139_v8 = vand.u32 4294901760, %v591_v58  ;;  %v621_v12 = vand.u32 4294901760, %v17_v61  ;;  %v123_v13 = vand.u32 4294901760, %v122_v59 }
  0x11   :  { %195 = vmatpush.msra.mxu2 %v509_v25  ;;  %245 = vmatpush.msra.mxu3 %v490_v17  ;;  %v624_v21 = vsub.f32 %v18_v53, %v596_v60  ;;  %v134_v30 = vsub.f32 %v574_v51, %v133_v63  ;;  %v145_v31 = vand.u32 4294901760, %v606_v0  ;;  %v636_v34 = vand.u32 4294901760, %v16_v2 }
  0x12   :  { %100 = vmatpush.msra.mxu1 %v99_v49  ;;  %51 = vmatpush.msra.mxu0 %v499_v20  ;;  %v638_v35 = vand.u32 4294901760, %v15_v29  ;;  %v151_v36 = vand.u32 4294901760, %v609_v1  ;;  %v129_v37 = vand.u32 4294901760, %v128_v7  ;;  %v140_v38 = vsub.f32 %v591_v58, %v139_v8 }
  0x13   :  { %198 = vmatpush.msra.mxu2 %v515_v28  ;;  %247 = vmatpush.msra.mxu3 %v499_v20  ;;  %v648_v40 = vsub.f32 %v17_v61, %v621_v12  ;;  %v135_v43 = vand.u32 4294901760, %v134_v30  ;;  %v146_v47 = vsub.f32 %v606_v0, %v145_v31  ;;  %v157_v49 = vand.u32 4294901760, %v624_v21 }
  0x14   :  { %106 = vmatpush.msra.mxu1 %v105_v55  ;;  %53 = vmatpush.msra.mxu0 %v528_v32  ;;  %v69_v42 = vsub.f32 %v15_v29, %v638_v35  ;;  %v659_v50 = vsub.f32 %v16_v2, %v636_v34  ;;  %v141_v53 = vand.u32 4294901760, %v140_v38  ;;  %v152_v55 = vsub.f32 %v609_v1, %v151_v36 }
  0x15   :  { %201 = vmatpush.msra.mxu2 %v532_v33  ;;  %249 = vmatpush.msra.mxu3 %v528_v32  ;;  %v163_v56 = vand.u32 4294901760, %v648_v40  ;;  %v147_v61 = vand.u32 4294901760, %v146_v47  ;;  %vm377_vm0 = vcmask 782336  }
  0x16   :  { %112 = vmatpush.msra.mxu1 %v111_v62  ;;  %55 = vmatpush.msra.mxu0 %v556_v44  ;;  %v70_v59 = vand.u32 4294901760, %v69_v42  ;;  %v158_v62 = vsub.f32 %v624_v21, %v157_v49  ;;  %v169_v2 = vand.u32 4294901760, %v659_v50 }
  0x17   :  { %204 = vmatpush.msra.mxu2 %v559_v45  ;;  %251 = vmatpush.msra.mxu3 %v556_v44  ;;  %v164_v7 = vsub.f32 %v648_v40, %v163_v56 }
  0x18   :  { %118 = vmatpush.msra.mxu1 %v117_v6  ;;  %57 = vmatpush.msra.mxu0 %v561_v46  ;;  %v153_v6 = vand.u32 4294901760, %v152_v55  ;;  %v159_v29 = vand.u32 4294901760, %v158_v62  ;;  %v170_v30 = vsub.f32 %v659_v50, %v169_v2 }
  0x19   :  { %207 = vmatpush.msra.mxu2 %v574_v51  ;;  %253 = vmatpush.msra.mxu3 %v561_v46 }
  0x1a   :  { %124 = vmatpush.msra.mxu1 %v123_v13  ;;  %59 = vmatpush.msra.mxu0 %v576_v52  ;;  %v71_v13 = vsub.f32 %v69_v42, %v70_v59 }
  0x1b   :  { %210 = vmatpush.msra.mxu2 %v591_v58  ;;  %255 = vmatpush.msra.mxu3 %v576_v52 }
  0x1c   :  { %130 = vmatpush.msra.mxu1 %v129_v37  ;;  %61 = vmatpush.msra.mxu0 %v581_v54  ;;  %v165_v37 = vand.u32 4294901760, %v164_v7  ;;  %v72_v38 = vand.u32 4294901760, %v71_v13 }
  0x1d   :  { %213 = vmatpush.msra.mxu2 %v606_v0  ;;  %257 = vmatpush.msra.mxu3 %v581_v54 }
  0x1e   :  { %136 = vmatpush.msra.mxu1 %v135_v43  ;;  %63 = vmatpush.msra.mxu0 %v596_v60  ;;  %v171_v43 = vand.u32 4294901760, %v170_v30 }
  0x1f   :  { %216 = vmatpush.msra.mxu2 %v609_v1  ;;  %259 = vmatpush.msra.mxu3 %v596_v60 }
  0x20   :  { %142 = vmatpush.msra.mxu1 %v141_v53  ;;  %65 = vmatpush.msra.mxu0 %v621_v12 }
  0x21   :  { %219 = vmatpush.msra.mxu2 %v624_v21  ;;  %261 = vmatpush.msra.mxu3 %v621_v12 }
  0x22   :  { %148 = vmatpush.msra.mxu1 %v147_v61  ;;  %67 = vmatpush.msra.mxu0 %v636_v34 }
  0x23   :  { %222 = vmatpush.msra.mxu2 %v648_v40  ;;  %263 = vmatpush.msra.mxu3 %v636_v34 }
  0x24   :  { %274 = vmatpush.msrb.mxu0 %v79_v22  ;;  %154 = vmatpush.msra.mxu1 %v153_v6 }
  0x25   :  { %225 = vmatpush.msra.mxu2 %v659_v50  ;;  %267 = vmatmul.f32.vlgmr.msra.gmra.mxu3 %v70_v59 }
  0x26   :  { %278 = vmatpush.msrb.mxu0 %v85_v23  ;;  %160 = vmatpush.msra.mxu1 %v159_v29 }
  0x27   :  { %228 = vmatmul.f32.vlgmr.msra.gmra.mxu2 %v69_v42  ;;  %73 = vmatmul.f32.vlgmr.msra.gmra.mxu0 %v72_v38 }
  0x28   :  { %282 = vmatpush.msrb.mxu0 %v91_v24  ;;  %166 = vmatpush.msra.mxu1 %v165_v37 }
  0x2a   :  { %286 = vmatpush.msrb.mxu0 %v97_v26  ;;  %172 = vmatpush.msra.mxu1 %v171_v43 }
  0x2b   :  { %174 = vmatmul.f32.vlgmr.msra.gmra.mxu1 %v638_v35 }
  0x2c   :  { %341 = vmatpush.msrb.mxu1 %v453_v3  ;;  %290 = vmatpush.msrb.mxu0 %v103_v27  ;;  %v396_v3 = vld [vmem:[%s740_s1] ss:$0 sm:$0xff] }
  0x2e   :  { %343 = vmatpush.msrb.mxu1 %v455_v4  ;;  %294 = vmatpush.msrb.mxu0 %v109_v39 }
  0x30   :  { %345 = vmatpush.msrb.mxu1 %v457_v5  ;;  %298 = vmatpush.msrb.mxu0 %v115_v41 }
  0x32   :  { %347 = vmatpush.msrb.mxu1 %v468_v9  ;;  %302 = vmatpush.msrb.mxu0 %v121_v48 }
  0x34   :  { %349 = vmatpush.msrb.mxu1 %v470_v10  ;;  %306 = vmatpush.msrb.mxu0 %v127_v57 }
  0x36   :  { %351 = vmatpush.msrb.mxu1 %v472_v11  ;;  %310 = vmatpush.msrb.mxu0 %v133_v63 }
  0x38   :  { %353 = vmatpush.msrb.mxu1 %v490_v17  ;;  %314 = vmatpush.msrb.mxu0 %v139_v8 }
  0x3a   :  { %355 = vmatpush.msrb.mxu1 %v499_v20  ;;  %318 = vmatpush.msrb.mxu0 %v145_v31 }
  0x3c   :  { %357 = vmatpush.msrb.mxu1 %v528_v32  ;;  %322 = vmatpush.msrb.mxu0 %v151_v36 }
  0x3e   :  { %359 = vmatpush.msrb.mxu1 %v556_v44  ;;  %326 = vmatpush.msrb.mxu0 %v157_v49 }
  0x40   :  { %361 = vmatpush.msrb.mxu1 %v561_v46  ;;  %330 = vmatpush.msrb.mxu0 %v163_v56 }
  0x42   :  { %363 = vmatpush.msrb.mxu1 %v576_v52  ;;  %334 = vmatpush.msrb.mxu0 %v169_v2 }
  0x43   :  { %336 = vmatmul.f32.vlgmr.msrb.gmra.mxu0 %v638_v35 }
  0x44   :  { %365 = vmatpush.msrb.mxu1 %v581_v54 }
  0x46   :  { %367 = vmatpush.msrb.mxu1 %v596_v60 }
  0x48   :  { %369 = vmatpush.msrb.mxu1 %v621_v12 }
  0x4a   :  { %371 = vmatpush.msrb.mxu1 %v636_v34 }
  0x4b   :  { %373 = vmatmul.f32.vlgmr.msrb.gmra.mxu1 %v638_v35 }
  0xa4   :  { %v74_v4 = vpop.f32.mrf.mxu0 }
  0xa5   :  { %v75_v5 = vadd.f32 %v396_v3, %v74_v4 }
  0xa8   :  { %v175_v9 = vpop.f32.mrf.mxu1  ;;  %v268_v15 = vpop.f32.mrf.mxu3 }
  0xa9   :  { %v176_v10 = vadd.f32 %v175_v9, %v75_v5 }
  0xaa   :  { %v229_v11 = vpop.f32.mrf.mxu2 }
  0xab   :  { %v230_v14 = vadd.f32 %v229_v11, %v176_v10 }
  0xad   :  { %v269_v16 = vadd.f32 %v268_v15, %v230_v14 }
  0xc0   :  { %v337_v17 = vpop.f32.mrf.mxu0 }
  0xc1   :  { %v338_v18 = vadd.f32 %v337_v17, %v269_v16 }
  0xc8   :  { %v374_v19 = vpop.f32.mrf.mxu1 }
  0xc9   :  { %v375_v20 = vadd.f32 %v374_v19, %v338_v18 }
  0xcb   :  { %378 = vst.msk [vmem:[#allocation2] sm:$0x1f] %vm377_vm0, %v375_v20 }
  0xcc   :  { %389 = dma.vmem_to_hbm [thread:$0]  %s385_s20, 128, %s387_s23, [#allocation3]  }
  0xcd   :  { %421 = dma.done.wait [#allocation3], 128  }
  0xce   :  { %422 = vsyncadd [#allocation3], 4294967168 }
  0xcf   :  { %394 = vsyncpa [#allocation3], 1 }

</bundles_post_ra>
